<compile_context>
chip_gen: v7x
topology: tpu7x:2x2x1
jax: 0.10.0
libtpu: 0.0.40
codegen_flags: <defaults>
</compile_context>

<pallas_src>
import jax
import jax.numpy as jnp
from jax.experimental import pallas as pl
from jax.experimental.pallas import tpu as pltpu

LN_EPS = 1e-5
_LANES = 128


def _round_up(n, m):
    return (n + m - 1) // m * m


def _dp_kernel(x_ref, m_ref, nd_ref, w1_ref, w2_ref, wp_ref, vec_ref, o_ref):
    # One batch element per grid step; channels on sublanes, time on lanes.
    #   x_ref  : (1, Cin, Tp) f32     m_ref / nd_ref : (1, 1, Tp) f32
    #   w1_ref : (F, K*(Cin+1)) bf16  w2_ref : (F, K*F) bf16   wp_ref : (1, F) bf16
    #   vec_ref: (F, 8) f32, columns = [b1, g1, be1, b2, g2, be2, bp, 0]
    #   o_ref  : (1, 1, Tp) f32  (lane-dense output row)
    Cin = x_ref.shape[1]
    C1 = Cin + 1
    F = w1_ref.shape[0]
    K = w1_ref.shape[1] // C1
    pad = K // 2
    Tp = x_ref.shape[-1]

    m = m_ref[0]                                    # (1, Tp)
    x = x_ref[0] * m                                # (Cin, Tp)
    nd = nd_ref[0] * m                              # (1, Tp)

    def im2col(a):
        # a: (C, Tp) f32 -> (K*C, Tp) bf16, row-block k holds a[:, t + k - pad].
        # Padded tail columns (t >= T) are zero (mask), so the lane rolls
        # reproduce Conv1d's zero "same" padding without boundary masks.
        taps = []
        for k in range(K):
            s = (pad - k) % Tp
            taps.append(a if s == 0 else pltpu.roll(a, shift=s, axis=1))
        return jnp.concatenate(taps, axis=0).astype(jnp.bfloat16)

    ones_row = jnp.ones((1, F), jnp.float32)
    inv_f = jnp.float32(1.0 / F)

    def channel_layernorm(h, g, beta):
        # Channel (sublane) reductions on the MXU; everything stays f32.
        mu = jnp.dot(ones_row, h, preferred_element_type=jnp.float32) * inv_f   # (1, Tp)
        d = h - mu
        var = jnp.dot(ones_row, d * d, preferred_element_type=jnp.float32) * inv_f
        return d * jax.lax.rsqrt(var + LN_EPS) * g + beta

    b1, g1, be1 = vec_ref[:, 0:1], vec_ref[:, 1:2], vec_ref[:, 2:3]
    b2, g2, be2 = vec_ref[:, 3:4], vec_ref[:, 4:5], vec_ref[:, 5:6]
    bp = vec_ref[0:1, 6:7]

    # ---- block 1: fused im2col conv over [x ; notedur] (single MXU matmul) ----
    xcat = jnp.concatenate([x, nd], axis=0)                              # (C1, Tp) f32
    h = jnp.dot(w1_ref[...], im2col(xcat),
                preferred_element_type=jnp.float32) + b1                 # (F, Tp)
    h = jnp.maximum(h, 0.0)
    h = channel_layernorm(h, g1, be1)
    # dropout -> identity (eval)

    # ---- block 2 ----
    h = jnp.dot(w2_ref[...], im2col(h * m),
                preferred_element_type=jnp.float32) + b2                 # (F, Tp)
    h = jnp.maximum(h, 0.0)
    h = channel_layernorm(h, g2, be2)
    # dropout -> identity (eval)

    # ---- projection (1x1 conv) -> lane-dense (1, Tp) output row ----
    pm = (h * m).astype(jnp.bfloat16)
    out = jnp.dot(wp_ref[...], pm, preferred_element_type=jnp.float32) + bp
    o_ref[0] = (out * m).astype(o_ref.dtype)


def pack_duration_predictor_params(params):
    """One-time packing of PyTorch-layout DurationPredictor weights.

    Call once and reuse the result: all transposes / reshapes / bf16 casts are
    hoisted out of the per-call forward path.
    """
    F, C1, K = params["w1"].shape
    assert K % 2 == 1, "im2col 'same' conv assumes odd kernel_size"
    assert params["w2"].shape == (F, F, K)
    # (O, C, K) -> (O, K, C) -> (O, K*C): tap-major / channel-minor, matching
    # the kernel's stacked im2col operand ordering.
    w1p = jnp.transpose(params["w1"], (0, 2, 1)).reshape(F, K * C1)
    w2p = jnp.transpose(params["w2"], (0, 2, 1)).reshape(F, K * F)
    wpp = params["wp"][:, :, 0]                                          # (1, F)
    vecs = jnp.stack([
        params["b1"], params["g1"], params["be1"],
        params["b2"], params["g2"], params["be2"],
        jnp.full((F,), params["bp"][0]), jnp.zeros((F,)),
    ], axis=1).astype(jnp.float32)                                       # (F, 8)
    return {
        "w1": w1p.astype(jnp.bfloat16),
        "w2": w2p.astype(jnp.bfloat16),
        "wp": wpp.astype(jnp.bfloat16),
        "vecs": vecs,
    }


@jax.jit
def duration_predictor_forward(x, x_mask, notedur, packed):
    """x: (B, Cin, T), x_mask: (B, 1, T), notedur: (B, T) -> (B, 1, T).

    Mirrors DurationPredictor.forward with g=None, eval mode (dropout=identity).
    """
    B, Cin, T = x.shape
    C1 = Cin + 1
    F = packed["w1"].shape[0]
    assert packed["w1"].shape[1] % C1 == 0, "conv_1 expects the extra notedur channel"
    K = packed["w1"].shape[1] // C1
    pad = K // 2
    assert K % 2 == 1, "im2col 'same' conv assumes odd kernel_size"

    # Lane-dense time axis: pad to a multiple of 128 with >= `pad` zero columns
    # past T, so in-kernel rolls + the zero mask reproduce Conv1d zero padding.
    Tp = _round_up(T + pad, _LANES)
    # TODO(synk): tile the time axis (with a (K-1)-lane halo) once the padded
    #             working set no longer fits comfortably in VMEM (v7x: 64 MiB).
    assert Tp <= 16384, "time axis too long for the single-tile kernel"

    ext = Tp - T
    xf = jnp.pad(x.astype(jnp.float32), ((0, 0), (0, 0), (0, ext)))
    mf = jnp.pad(x_mask.astype(jnp.float32), ((0, 0), (0, 0), (0, ext)))
    ndf = jnp.pad(notedur.astype(jnp.float32)[:, None, :], ((0, 0), (0, 0), (0, ext)))

    full = lambda s: pl.BlockSpec(s, lambda b: (0,) * len(s))

    flops = 2 * B * Tp * (F * K * C1 + F * K * F + F + 4 * F)
    bytes_accessed = int(
        4 * (xf.size + mf.size + ndf.size + B * Tp)
        + 2 * (packed["w1"].size + packed["w2"].size + packed["wp"].size)
        + 4 * packed["vecs"].size)
    cost = pl.CostEstimate(flops=flops, transcendentals=2 * B * Tp,
                           bytes_accessed=bytes_accessed)

    out = pl.pallas_call(
        _dp_kernel,
        out_shape=jax.ShapeDtypeStruct((B, 1, Tp), jnp.float32),
        grid=(B,),
        in_specs=[
            pl.BlockSpec((1, Cin, Tp), lambda b: (b, 0, 0)),     # x
            pl.BlockSpec((1, 1, Tp), lambda b: (b, 0, 0)),       # mask
            pl.BlockSpec((1, 1, Tp), lambda b: (b, 0, 0)),       # notedur
            full((F, K * C1)),                                   # packed conv_1 weight
            full((F, K * F)),                                    # packed conv_2 weight
            full((1, F)),                                        # proj weight
            full((F, 8)),                                        # b1,g1,be1,b2,g2,be2,bp
        ],
        out_specs=pl.BlockSpec((1, 1, Tp), lambda b: (b, 0, 0)),
        compiler_params=pltpu.CompilerParams(
            dimension_semantics=("parallel",),
            vmem_limit_bytes=32 * 1024 * 1024),
        cost_estimate=cost,
    )(xf, mf, ndf, packed["w1"], packed["w2"], packed["wp"], packed["vecs"])

    return out[:, :, :T]                                         # (B, 1, T)


# ----------------- pure-JAX reference (NCT layout, mirrors PyTorch) -----------
def _ref_forward(x, x_mask, notedur, p, quantize_mxu_inputs=False):
    # quantize_mxu_inputs=True rounds the conv operands to bf16 exactly like the
    # kernel does (f32 accumulation), so the comparison can be tight.
    if quantize_mxu_inputs:
        q = lambda a: a.astype(jnp.bfloat16).astype(jnp.float32)
    else:
        q = lambda a: a
    xc = jnp.concatenate([x, notedur[:, None, :]], axis=1)

    def conv1d(h, w, b, pad):
        y = jax.lax.conv_general_dilated(
            q(h), q(w), window_strides=(1,), padding=[(pad, pad)],
            dimension_numbers=("NCH", "OIH", "NCH"))
        return y + b[None, :, None]

    def ln(h, g, beta):
        mu = jnp.mean(h, axis=1, keepdims=True)
        var = jnp.mean((h - mu) ** 2, axis=1, keepdims=True)
        return (h - mu) * jax.lax.rsqrt(var + LN_EPS) * g[None, :, None] \
            + beta[None, :, None]

    pad = p["w1"].shape[2] // 2
    h = conv1d(xc * x_mask, p["w1"], p["b1"], pad)
    h = jax.nn.relu(h)
    h = ln(h, p["g1"], p["be1"])
    h = conv1d(h * x_mask, p["w2"], p["b2"], pad)
    h = jax.nn.relu(h)
    h = ln(h, p["g2"], p["be2"])
    o = conv1d(h * x_mask, p["wp"], p["bp"], 0)
    return o * x_mask


if __name__ == "__main__":
    # Module hyper-parameters (small, consistent with DurationPredictor.__init__)
    in_channels, filter_channels, kernel_size, p_dropout = 4, 32, 3, 0.5
    B, T = 2, 16
    C1 = in_channels + 1

    key = jax.random.PRNGKey(0)
    keys = jax.random.split(key, 10)

    params = {
        "w1": 0.1 * jax.random.normal(keys[0], (filter_channels, C1, kernel_size), jnp.float32),
        "b1": 0.1 * jax.random.normal(keys[1], (filter_channels,), jnp.float32),
        "g1": jnp.ones((filter_channels,), jnp.float32),
        "be1": jnp.zeros((filter_channels,), jnp.float32),
        "w2": 0.1 * jax.random.normal(keys[2], (filter_channels, filter_channels, kernel_size), jnp.float32),
        "b2": 0.1 * jax.random.normal(keys[3], (filter_channels,), jnp.float32),
        "g2": jnp.ones((filter_channels,), jnp.float32),
        "be2": jnp.zeros((filter_channels,), jnp.float32),
        "wp": 0.1 * jax.random.normal(keys[4], (1, filter_channels, 1), jnp.float32),
        "bp": 0.1 * jax.random.normal(keys[5], (1,), jnp.float32),
    }

    x = jax.random.normal(keys[6], (B, in_channels, T), jnp.float32)
    notedur = jax.random.uniform(keys[7], (B, T), jnp.float32) * 4.0
    # mask: first batch fully valid, second batch last 5 frames masked out
    lengths = jnp.array([T, T - 5])
    x_mask = (jnp.arange(T)[None, :] < lengths[:, None]).astype(jnp.float32)[:, None, :]

    packed = pack_duration_predictor_params(params)   # one-time packing (hoisted)
    out = duration_predictor_forward(x, x_mask, notedur, packed)
    out = jax.block_until_ready(out)
    assert out.shape == (B, 1, T)

    # Tight check vs. a reference that rounds conv operands to bf16 like the kernel.
    ref_q = _ref_forward(x, x_mask, notedur, params, quantize_mxu_inputs=True)
    err_q = float(jnp.max(jnp.abs(out - ref_q)))
    assert jnp.allclose(out, ref_q, atol=1e-2, rtol=1e-2), \
        f"bf16-input reference: max abs diff = {err_q}"

    # Looser sanity check vs. the exact f32 PyTorch-equivalent reference
    # (difference is bounded by the intentional bf16 MXU-input quantization).
    ref_f = _ref_forward(x, x_mask, notedur, params, quantize_mxu_inputs=False)
    err_f = float(jnp.max(jnp.abs(out - ref_f)))
    assert jnp.allclose(out, ref_f, atol=1e-1, rtol=1e-1), \
        f"f32 reference: max abs diff = {err_f}"

    print("KERNEL_OK")
</pallas_src>

<mosaic_0001>
module attributes {stable_mosaic.version = 11 : i64} {
  func.func @_dp_kernel(%arg0: i32, %arg1: memref<1x4x128xf32, #tpu.memory_space<vmem>>, %arg2: memref<1x1x128xf32, #tpu.memory_space<vmem>>, %arg3: memref<1x1x128xf32, #tpu.memory_space<vmem>>, %arg4: memref<32x15xbf16, #tpu.memory_space<vmem>>, %arg5: memref<32x96xbf16, #tpu.memory_space<vmem>>, %arg6: memref<1x32xbf16, #tpu.memory_space<vmem>>, %arg7: memref<32x8xf32, #tpu.memory_space<vmem>>, %arg8: memref<1x1x128xf32, #tpu.memory_space<vmem>>) attributes {dimension_semantics = [#tpu.dimension_semantics<parallel>], iteration_bounds = array<i64: 2>, scalar_prefetch = 0 : i64, scratch_operands = 0 : i64, tpu.core_type = #tpu.core_type<tc>, window_params = [{transform_indices = @transform_0, window_bounds = array<i64: 1, 4, 128>}, {transform_indices = @transform_1, window_bounds = array<i64: 1, 1, 128>}, {transform_indices = @transform_2, window_bounds = array<i64: 1, 1, 128>}, {pipeline_mode = #tpu.pipeline_mode<synchronous>, transform_indices = @transform_3, window_bounds = array<i64: 32, 15>}, {pipeline_mode = #tpu.pipeline_mode<synchronous>, transform_indices = @transform_4, window_bounds = array<i64: 32, 96>}, {pipeline_mode = #tpu.pipeline_mode<synchronous>, transform_indices = @transform_5, window_bounds = array<i64: 1, 32>}, {pipeline_mode = #tpu.pipeline_mode<synchronous>, transform_indices = @transform_6, window_bounds = array<i64: 32, 8>}, {transform_indices = @transform_7, window_bounds = array<i64: 1, 1, 128>}]} {
    %c0 = arith.constant 0 : index
    %c0_0 = arith.constant 0 : index
    %c0_1 = arith.constant 0 : index
    %0 = vector.load %arg2[%c0, %c0_0, %c0_1] : memref<1x1x128xf32, #tpu.memory_space<vmem>>, vector<1x1x128xf32>
    %1 = vector.shape_cast %0 : vector<1x1x128xf32> to vector<1x128xf32>
    %c0_2 = arith.constant 0 : index
    %c0_3 = arith.constant 0 : index
    %c0_4 = arith.constant 0 : index
    %2 = vector.load %arg1[%c0_2, %c0_3, %c0_4] : memref<1x4x128xf32, #tpu.memory_space<vmem>>, vector<1x4x128xf32>
    %3 = vector.shape_cast %2 : vector<1x4x128xf32> to vector<4x128xf32>
    %4 = vector.broadcast %1 : vector<1x128xf32> to vector<4x128xf32>
    %5 = arith.mulf %3, %4 : vector<4x128xf32>
    %c0_5 = arith.constant 0 : index
    %c0_6 = arith.constant 0 : index
    %c0_7 = arith.constant 0 : index
    %6 = vector.load %arg3[%c0_5, %c0_6, %c0_7] : memref<1x1x128xf32, #tpu.memory_space<vmem>>, vector<1x1x128xf32>
    %7 = vector.shape_cast %6 : vector<1x1x128xf32> to vector<1x128xf32>
    %8 = arith.mulf %7, %1 : vector<1x128xf32>
    %cst = arith.constant 1.000000e+00 : f32
    %9 = vector.broadcast %cst : f32 to vector<1x32xf32>
    %c0_8 = arith.constant 0 : index
    %c0_9 = arith.constant 0 : index
    %10 = vector.load %arg7[%c0_8, %c0_9] : memref<32x8xf32, #tpu.memory_space<vmem>>, vector<32x1xf32>
    %c0_10 = arith.constant 0 : index
    %c1 = arith.constant 1 : index
    %11 = vector.load %arg7[%c0_10, %c1] : memref<32x8xf32, #tpu.memory_space<vmem>>, vector<32x1xf32>
    %c0_11 = arith.constant 0 : index
    %c2 = arith.constant 2 : index
    %12 = vector.load %arg7[%c0_11, %c2] : memref<32x8xf32, #tpu.memory_space<vmem>>, vector<32x1xf32>
    %c0_12 = arith.constant 0 : index
    %c3 = arith.constant 3 : index
    %13 = vector.load %arg7[%c0_12, %c3] : memref<32x8xf32, #tpu.memory_space<vmem>>, vector<32x1xf32>
    %c0_13 = arith.constant 0 : index
    %c4 = arith.constant 4 : index
    %14 = vector.load %arg7[%c0_13, %c4] : memref<32x8xf32, #tpu.memory_space<vmem>>, vector<32x1xf32>
    %c0_14 = arith.constant 0 : index
    %c5 = arith.constant 5 : index
    %15 = vector.load %arg7[%c0_14, %c5] : memref<32x8xf32, #tpu.memory_space<vmem>>, vector<32x1xf32>
    %c0_15 = arith.constant 0 : index
    %c6 = arith.constant 6 : index
    %16 = vector.load %arg7[%c0_15, %c6] : memref<32x8xf32, #tpu.memory_space<vmem>>, vector<1x1xf32>
    %17 = tpu.concatenate %5, %8 in 0 : vector<4x128xf32>, vector<1x128xf32> -> vector<5x128xf32>
    %c0_16 = arith.constant 0 : index
    %c0_17 = arith.constant 0 : index
    %18 = vector.load %arg4[%c0_16, %c0_17] : memref<32x15xbf16, #tpu.memory_space<vmem>>, vector<32x15xbf16>
    %c1_i32 = arith.constant 1 : i32
    %19 = tpu.dynamic_rotate %17 by %c1_i32 dim 1 : vector<5x128xf32>, i32 -> vector<5x128xf32>
    %c127_i32 = arith.constant 127 : i32
    %20 = tpu.dynamic_rotate %17 by %c127_i32 dim 1 : vector<5x128xf32>, i32 -> vector<5x128xf32>
    %21 = tpu.concatenate %19, %17, %20 in 0 : vector<5x128xf32>, vector<5x128xf32>, vector<5x128xf32> -> vector<15x128xf32>
    %22 = arith.truncf %21 : vector<15x128xf32> to vector<15x128xbf16>
    %cst_18 = arith.constant dense<0.000000e+00> : vector<32x128xf32>
    %23 = tpu.matmul %18, %22, %cst_18 {dimension_numbers = #tpu.dot_dimension_numbers<[1], [0], [0], [1], [0, 0, 1, 1], [], []>} : vector<32x15xbf16>, vector<15x128xbf16>, vector<32x128xf32> -> vector<32x128xf32>
    %24 = vector.broadcast %10 : vector<32x1xf32> to vector<32x128xf32>
    %25 = arith.addf %23, %24 : vector<32x128xf32>
    %cst_19 = arith.constant 0.000000e+00 : f32
    %26 = vector.broadcast %cst_19 : f32 to vector<32x128xf32>
    %27 = arith.maximumf %25, %26 : vector<32x128xf32>
    %cst_20 = arith.constant dense<0.000000e+00> : vector<1x128xf32>
    %28 = tpu.matmul %9, %27, %cst_20 {dimension_numbers = #tpu.dot_dimension_numbers<[1], [0], [0], [1], [0, 0, 1, 1], [], []>} : vector<1x32xf32>, vector<32x128xf32>, vector<1x128xf32> -> vector<1x128xf32>
    %cst_21 = arith.constant 3.125000e-02 : f32
    %29 = vector.broadcast %cst_21 : f32 to vector<1x128xf32>
    %30 = arith.mulf %28, %29 : vector<1x128xf32>
    %31 = vector.broadcast %30 : vector<1x128xf32> to vector<32x128xf32>
    %32 = arith.subf %27, %31 : vector<32x128xf32>
    %33 = arith.mulf %32, %32 : vector<32x128xf32>
    %cst_22 = arith.constant dense<0.000000e+00> : vector<1x128xf32>
    %34 = tpu.matmul %9, %33, %cst_22 {dimension_numbers = #tpu.dot_dimension_numbers<[1], [0], [0], [1], [0, 0, 1, 1], [], []>} : vector<1x32xf32>, vector<32x128xf32>, vector<1x128xf32> -> vector<1x128xf32>
    %cst_23 = arith.constant 3.125000e-02 : f32
    %35 = vector.broadcast %cst_23 : f32 to vector<1x128xf32>
    %36 = arith.mulf %34, %35 : vector<1x128xf32>
    %cst_24 = arith.constant 9.99999974E-6 : f32
    %37 = vector.broadcast %cst_24 : f32 to vector<1x128xf32>
    %38 = arith.addf %36, %37 : vector<1x128xf32>
    %39 = math.rsqrt %38 : vector<1x128xf32>
    %40 = vector.broadcast %39 : vector<1x128xf32> to vector<32x128xf32>
    %41 = arith.mulf %32, %40 : vector<32x128xf32>
    %42 = vector.broadcast %11 : vector<32x1xf32> to vector<32x128xf32>
    %43 = arith.mulf %41, %42 : vector<32x128xf32>
    %44 = vector.broadcast %12 : vector<32x1xf32> to vector<32x128xf32>
    %45 = arith.addf %43, %44 : vector<32x128xf32>
    %c0_25 = arith.constant 0 : index
    %c0_26 = arith.constant 0 : index
    %46 = vector.load %arg5[%c0_25, %c0_26] : memref<32x96xbf16, #tpu.memory_space<vmem>>, vector<32x96xbf16>
    %47 = vector.broadcast %1 : vector<1x128xf32> to vector<32x128xf32>
    %48 = arith.mulf %45, %47 : vector<32x128xf32>
    %c1_i32_27 = arith.constant 1 : i32
    %49 = tpu.dynamic_rotate %48 by %c1_i32_27 dim 1 : vector<32x128xf32>, i32 -> vector<32x128xf32>
    %c127_i32_28 = arith.constant 127 : i32
    %50 = tpu.dynamic_rotate %48 by %c127_i32_28 dim 1 : vector<32x128xf32>, i32 -> vector<32x128xf32>
    %51 = tpu.concatenate %49, %48, %50 in 0 : vector<32x128xf32>, vector<32x128xf32>, vector<32x128xf32> -> vector<96x128xf32>
    %52 = arith.truncf %51 : vector<96x128xf32> to vector<96x128xbf16>
    %cst_29 = arith.constant dense<0.000000e+00> : vector<32x128xf32>
    %53 = tpu.matmul %46, %52, %cst_29 {dimension_numbers = #tpu.dot_dimension_numbers<[1], [0], [0], [1], [0, 0, 1, 1], [], []>} : vector<32x96xbf16>, vector<96x128xbf16>, vector<32x128xf32> -> vector<32x128xf32>
    %54 = vector.broadcast %13 : vector<32x1xf32> to vector<32x128xf32>
    %55 = arith.addf %53, %54 : vector<32x128xf32>
    %cst_30 = arith.constant 0.000000e+00 : f32
    %56 = vector.broadcast %cst_30 : f32 to vector<32x128xf32>
    %57 = arith.maximumf %55, %56 : vector<32x128xf32>
    %cst_31 = arith.constant dense<0.000000e+00> : vector<1x128xf32>
    %58 = tpu.matmul %9, %57, %cst_31 {dimension_numbers = #tpu.dot_dimension_numbers<[1], [0], [0], [1], [0, 0, 1, 1], [], []>} : vector<1x32xf32>, vector<32x128xf32>, vector<1x128xf32> -> vector<1x128xf32>
    %cst_32 = arith.constant 3.125000e-02 : f32
    %59 = vector.broadcast %cst_32 : f32 to vector<1x128xf32>
    %60 = arith.mulf %58, %59 : vector<1x128xf32>
    %61 = vector.broadcast %60 : vector<1x128xf32> to vector<32x128xf32>
    %62 = arith.subf %57, %61 : vector<32x128xf32>
    %63 = arith.mulf %62, %62 : vector<32x128xf32>
    %cst_33 = arith.constant dense<0.000000e+00> : vector<1x128xf32>
    %64 = tpu.matmul %9, %63, %cst_33 {dimension_numbers = #tpu.dot_dimension_numbers<[1], [0], [0], [1], [0, 0, 1, 1], [], []>} : vector<1x32xf32>, vector<32x128xf32>, vector<1x128xf32> -> vector<1x128xf32>
    %cst_34 = arith.constant 3.125000e-02 : f32
    %65 = vector.broadcast %cst_34 : f32 to vector<1x128xf32>
    %66 = arith.mulf %64, %65 : vector<1x128xf32>
    %cst_35 = arith.constant 9.99999974E-6 : f32
    %67 = vector.broadcast %cst_35 : f32 to vector<1x128xf32>
    %68 = arith.addf %66, %67 : vector<1x128xf32>
    %69 = math.rsqrt %68 : vector<1x128xf32>
    %70 = vector.broadcast %69 : vector<1x128xf32> to vector<32x128xf32>
    %71 = arith.mulf %62, %70 : vector<32x128xf32>
    %72 = vector.broadcast %14 : vector<32x1xf32> to vector<32x128xf32>
    %73 = arith.mulf %71, %72 : vector<32x128xf32>
    %74 = vector.broadcast %15 : vector<32x1xf32> to vector<32x128xf32>
    %75 = arith.addf %73, %74 : vector<32x128xf32>
    %76 = vector.broadcast %1 : vector<1x128xf32> to vector<32x128xf32>
    %77 = arith.mulf %75, %76 : vector<32x128xf32>
    %78 = arith.truncf %77 : vector<32x128xf32> to vector<32x128xbf16>
    %c0_36 = arith.constant 0 : index
    %c0_37 = arith.constant 0 : index
    %79 = vector.load %arg6[%c0_36, %c0_37] : memref<1x32xbf16, #tpu.memory_space<vmem>>, vector<1x32xbf16>
    %cst_38 = arith.constant dense<0.000000e+00> : vector<1x128xf32>
    %80 = tpu.matmul %79, %78, %cst_38 {dimension_numbers = #tpu.dot_dimension_numbers<[1], [0], [0], [1], [0, 0, 1, 1], [], []>} : vector<1x32xbf16>, vector<32x128xbf16>, vector<1x128xf32> -> vector<1x128xf32>
    %81 = vector.broadcast %16 : vector<1x1xf32> to vector<1x128xf32>
    %82 = arith.addf %80, %81 : vector<1x128xf32>
    %83 = arith.mulf %82, %1 : vector<1x128xf32>
    %c0_39 = arith.constant 0 : index
    %c0_40 = arith.constant 0 : index
    %c0_41 = arith.constant 0 : index
    %84 = vector.load %arg8[%c0_39, %c0_40, %c0_41] : memref<1x1x128xf32, #tpu.memory_space<vmem>>, vector<1x1x128xf32>
    %85 = vector.shape_cast %84 : vector<1x1x128xf32> to vector<1x128xf32>
    %86 = vector.shape_cast %83 : vector<1x128xf32> to vector<1x1x128xf32>
    tpu.vector_store %arg8[%c0_39, %c0_40, %c0_41], %86 {strides = array<i32>} : memref<1x1x128xf32, #tpu.memory_space<vmem>>, vector<1x1x128xf32>,
    return
  }
  func.func @transform_0(%arg0: i32) -> (i32, i32, i32) {
    %c0_i32 = arith.constant 0 : i32
    %c0_i32_0 = arith.constant 0 : i32
    %c0_i32_1 = arith.constant 0 : i32
    return %arg0, %c0_i32, %c0_i32_0 : i32, i32, i32
  }
  func.func @transform_1(%arg0: i32) -> (i32, i32, i32) {
    %c0_i32 = arith.constant 0 : i32
    %c0_i32_0 = arith.constant 0 : i32
    %c0_i32_1 = arith.constant 0 : i32
    return %arg0, %c0_i32, %c0_i32_0 : i32, i32, i32
  }
  func.func @transform_2(%arg0: i32) -> (i32, i32, i32) {
    %c0_i32 = arith.constant 0 : i32
    %c0_i32_0 = arith.constant 0 : i32
    %c0_i32_1 = arith.constant 0 : i32
    return %arg0, %c0_i32, %c0_i32_0 : i32, i32, i32
  }
  func.func @transform_3(%arg0: i32) -> (i32, i32) {
    %c0_i32 = arith.constant 0 : i32
    %c0_i32_0 = arith.constant 0 : i32
    %c0_i32_1 = arith.constant 0 : i32
    return %c0_i32, %c0_i32_0 : i32, i32
  }
  func.func @transform_4(%arg0: i32) -> (i32, i32) {
    %c0_i32 = arith.constant 0 : i32
    %c0_i32_0 = arith.constant 0 : i32
    %c0_i32_1 = arith.constant 0 : i32
    return %c0_i32, %c0_i32_0 : i32, i32
  }
  func.func @transform_5(%arg0: i32) -> (i32, i32) {
    %c0_i32 = arith.constant 0 : i32
    %c0_i32_0 = arith.constant 0 : i32
    %c0_i32_1 = arith.constant 0 : i32
    return %c0_i32, %c0_i32_0 : i32, i32
  }
  func.func @transform_6(%arg0: i32) -> (i32, i32) {
    %c0_i32 = arith.constant 0 : i32
    %c0_i32_0 = arith.constant 0 : i32
    %c0_i32_1 = arith.constant 0 : i32
    return %c0_i32, %c0_i32_0 : i32, i32
  }
  func.func @transform_7(%arg0: i32) -> (i32, i32, i32) {
    %c0_i32 = arith.constant 0 : i32
    %c0_i32_0 = arith.constant 0 : i32
    %c0_i32_1 = arith.constant 0 : i32
    return %arg0, %c0_i32, %c0_i32_0 : i32, i32, i32
  }
}

</mosaic_0001>

<bundles_post_ra>
// kernel: duration_predictor_forward.1
= control target key start
LH: loop header
LB: loop body
LE: loop exit
PB: predicated region body
PF: predicated region fallthrough
CT: control target
= control target key end

     0   :  { %12 = vsyncpa [#allocation3], 0  ;;  %s1714_s0 = inlined_call_operand.vmem [shape: f32[2,4,128], index: 0, kind: input, shape index: {}]   ;;  %s1715_s1 = inlined_call_operand.vmem [shape: f32[2,1,128], index: 1, kind: input, shape index: {}]   ;;  %s1716_s2 = inlined_call_operand.vmem [shape: f32[2,1,128], index: 2, kind: input, shape index: {}]   ;;  %s1717_s3 = inlined_call_operand.vmem [shape: bf16[32,15], index: 3, kind: input, shape index: {}]   ;;  %s1718_s4 = inlined_call_operand.vmem [shape: bf16[32,96], index: 4, kind: input, shape index: {}]   ;;  %s1719_s5 = inlined_call_operand.vmem [shape: bf16[1,32], index: 5, kind: input, shape index: {}]   ;;  %s1720_s6 = inlined_call_operand.vmem [shape: f32[32,8], index: 6, kind: input, shape index: {}]   ;;  %s1721_s7 = inlined_call_operand.hbm [shape: f32[2,1,128], index: 7, kind: output, shape index: {}]  }
   0x1   :  { %14 = vsyncpa [#allocation3 + $0x1], 0  ;;  %s1483_s24 = smov 0   ;;  %s1485_s25 = smov 0  }
   0x2   :  { %s1487_s26 = smov 0   ;;  %s1489_s27 = smov 0  }
   0x3 LB: > { %s1504_s28 = sadd.s32 4294967295, %s1426_s27   ;;  %s1113_s29 = sadd.s32 4294967294, %s1426_s27   ;;  %s1426_s27 = sphi %s1489_s27, %s1727_s27   ;;  %s1422_s26 = sphi %s1487_s26, %s1726_s26   ;;  %s1418_s25 = sphi %s1485_s25, %s1725_s25   ;;  %s1414_s24 = sphi %s1483_s24, %s1724_s24  }
   0x4   : > { %s1508_s30 = sadd.s32 1, %s1426_s27   ;;  %s189_s8 = sadd.s32 1, %s1422_s26 }
   0x5   : > { %s186_s9 = ssub.s32 %s1426_s27, %s1508_s30  ;;  %p199_p0 = scmp.ne.s32.totalorder %s1422_s26, %s1418_s25 }
   0x6   : > { %p187_p1 = scmp.eq.s32.totalorder %s186_s9, 0  ;;  %p200_p2 = scmp.eq.s32.totalorder %s1504_s28, 1 }
   0x7   : > { %p205_p3 = scmp.ne.s32.totalorder %s1418_s25, %s1414_s24  ;;  %p206_p4 = scmp.eq.s32.totalorder %s1113_s29, 1 }
   0x8   : > { %s1519_s10 = scalar_select %p187_p1, %s1422_s26, %s189_s8  }
   0x9   : > { %p1521_p5 = por %p200_p2, %p199_p0  ;;  %p1525_p6 = por %p206_p4, %p205_p3 }
   0xa   : > { %p1116_p7 = scmp.ge.s32.totalorder %s1426_s27, 1  ;;  %p255_p8 = scmp.lt.s32.totalorder %s1426_s27, 3 }
   0xc   : > { %p256_p9 = pnand %p1116_p7, %p255_p8 }
   0xd   : > { %p291_p10 = scmp.lt.s32.totalorder (!%p256_p9), %s1504_s28, 1  ;;  %v305_v0 = vlaneseq (!%p256_p9)  ;;  %vm324_vm0 = vcmask (!%p256_p9), 1043456   ;;  %v1356_v10 = vld [vmem:[%s1717_s3] sm:$0xff] (!%p256_p9)   ;;  %vm375_vm1 = vcmask (!%p256_p9), 121856   ;;  %s1428_s9 = smov (!%p256_p9), 127   ;;  %v1429_v13 = vmov (!%p256_p9), 0  }
   0xe   : > { %259 = sbr.rel (%p256_p9) target bundleno = 1932 (0x78c), region = 48  ;;  %1170 = vmatprep.mubr.msk.bf16.mxu0 (!%p256_p9), %vm375_vm1, %v1356_v10  ;;  %v1561_v12 = vld [vmem:[%s1720_s6] sm:$0xff] (!%p256_p9)  ;;  %1319 = vset.pattern.permute.xlu1 (!%p256_p9), %v1429_v13  ;;  %v1567_v14 = vld [vmem:[%s1720_s6 + $0x8] sm:$0xff] (!%p256_p9)  ;;  %v1573_v15 = vld [vmem:[%s1720_s6 + $0x10] sm:$0xff] (!%p256_p9)  ;;  %vm382_vm2 = vcmask (!%p256_p9), 1046528   ;;  %vm340_vm3 = vcmask (!%p256_p9), 1044480  }
   0xf   : > { %v306_v1 = vshrl.u32 (!%p256_p9), %v305_v0, 7  ;;  %1320 = vset.pattern.permute.xlu0 (!%p256_p9), %v1429_v13  ;;  %347 = vperm.xlu1 (!%p256_p9), %1319, %v1561_v12   ;;  %v1579_v16 = vld [vmem:[%s1720_s6 + $0x18] sm:$0xff] (!%p256_p9)  ;;  %vm342_vm4 = vcmask (!%p256_p9), 1041408   ;;  %vm383_vm5 = vcmask (!%p256_p9), 1047552   ;;  %v1431_v20 = vmov (!%p256_p9), 65535   ;;  %v1357_v28 = vld [vmem:[%s1717_s3 + $0x8] sm:$0xff] (!%p256_p9)  }
  0x10   : > { %v384_v21 = vsel (!%p256_p9), %vm382_vm2, 4294967295, %v1431_v20  ;;  %v1432_v29 = vmov (!%p256_p9), 0.0|0.0   ;;  %vm1433_vm6 = vmmov (!%p256_p9), 0   ;;  %v1434_v30 = vmov (!%p256_p9), 0.0   ;;  %s289_s18 = sand.u32 (!%p256_p9), 1, %s1418_s25   ;;  %s1131_s19 = sshll.u32 (!%p256_p9), %s1504_s28, 4 }
  0x11   : > { %v1536_v2 = vsub.s32 (!%p256_p9), 0, %v306_v1  ;;  %v385_v25 = vsel (!%p256_p9), %vm383_vm5, %v384_v21, 0  ;;  %1242 = vmatprep.subr.bf16.mxu1 (!%p256_p9), %v1432_v29  ;;  %1182 = vmatprep.mubr.msk.f32.mxu1 (!%p256_p9), %vm1433_vm6, %v1434_v30  ;;  %vm442_vm7 = vcmask (!%p256_p9), 261120   ;;  %v1435_v49 = vmov (!%p256_p9), 1.0   ;;  %s1672_s29 = scalar_lea.hbm (!%p256_p9), %s1721_s7, %s1131_s19 }
  0x12   : > { %v1436_v50 = vmov (!%p256_p9), 1   ;;  %v1437_v51 = vmov (!%p256_p9), 2   ;;  %vm706_vm8 = vcmask (!%p256_p9), 785408  }
  0x13   : > { %352 = vperm.xlu1 (!%p256_p9), %1319, %v1567_v14  }
  0x15   : > { %s292_s13 = scalar_select %p291_p10, %s1504_s28, 1 }
  0x16   : > { %s1028_s28 = scalar_lea.sflag [#allocation3], %s289_s18 }
  0x17   : > { %s1117_s14 = sshll.u32 %s292_s13, 2  ;;  %s297_s17 = scalar_lea.vmem %s1715_s1, %s292_s13  ;;  %362 = vperm.xlu1 %1319, %v1579_v16  }
  0x18   : > { %s294_s20 = scalar_lea.vmem %s1714_s0, %s1117_s14  ;;  %s300_s23 = scalar_lea.vmem %s1716_s2, %s292_s13  ;;  %v1544_v3 = vld [vmem:[%s297_s17] sm:$0x1] }
  0x19   : > { %v303_v4 = vld [vmem:[%s294_s20] sm:$0xf]  ;;  %v1548_v5 = vrot.slane %v1544_v3, %v1536_v2  ;;  %s1430_s17 = smov 1   ;;  %s290_s20 = scalar_lea.vmem [#allocation2], %s289_s18 }
  0x1a   : > { %v311_v6 = vld [vmem:[%s300_s23] sm:$0x1]  ;;  %s1040_s21 = sshll.u32 %s290_s20, 4  ;;  %s1674_s21 = int_to_ptr.vmem [resolvable:$true] %s1040_s21 }
  0x1b   : > { %v312_v7 = vmul.f32 %v311_v6, %v1544_v3  ;;  %v310_v8 = vmul.f32 %v1548_v5, %v303_v4  ;;  %1321 = vset.pattern.permute.xlu1 %v1436_v50  ;;  %s1364_s8 = scalar_lea.vmem %s1674_s21, 16 }
  0x1c   : > { %611 = vperm.xlu1 %1321, %v1561_v12   ;;  %p1365_p11 = scmp.ne.s32.totalorder %s1674_s21, %s1364_s8 }
  0x1d   : > { %v322_v9 = vrot.slane %v312_v7, %v1536_v2 }
  0x1e   : > { %p1366_p12 = pnand %p1365_p11, %p1521_p5 }
  0x1f   : > { %v325_v11 = vsel %vm324_vm0, %v310_v8, %v322_v9 }
  0x20   : > { %332 = vrot.lane.b32.xlu0 %v325_v11, %s1428_s9  ;;  %v335_v18 = vrot.slane %v325_v11, 3  ;;  %1323 = vset.pattern.permute.xlu1 %v1437_v51  ;;  %p1367_p13 = pneg %p1366_p12 }
  0x21   : > { %631 = vperm.xlu1 %1323, %v1561_v12  }
  0x24   : > { %330 = vrot.lane.b32.xlu0 %v325_v11, %s1430_s17 }
  0x25   : > { %635 = vperm.xlu1 %1323, %v1567_v14  }
  0x28   : > { %357 = vperm.xlu0 %1320, %v1573_v15  }
  0x29   : > { %1324 = vset.pattern.permute.xlu1 %v1436_v50 }
  0x2a   : > { %623 = vperm.xlu1 %1324, %v1579_v16  }
  0x2c   : > { %1322 = vset.pattern.permute.xlu0 %v1436_v50 }
  0x2d   : > { %615 = vperm.xlu0 %1322, %v1567_v14  }
  0x2e   : > { %1326 = vset.pattern.permute.xlu1 %v1437_v51 }
  0x2f   : > { %643 = vperm.xlu1 %1326, %v1579_v16  }
  0x31   : > { %619 = vperm.xlu0 %1322, %v1573_v15  }
  0x35   : > { %1325 = vset.pattern.permute.xlu0 %v1437_v51 }
  0x36   : > { %639 = vperm.xlu0 %1325, %v1573_v15  }
  0x8e   : > { %v348_v31 = vpop.permute.xlu1 %347 }
  0x92   : > { %v333_v17 = vpop.permute.xlu0 %332  ;;  %v353_v32 = vpop.permute.xlu1 %352 }
  0x93   : > { %v338_v19 = vrot.slane %v333_v17, 6 }
  0x95   : > { %v343_v24 = vsel %vm342_vm4, %v335_v18, %v338_v19 }
  0x96   : > { %v331_v22 = vpop.permute.xlu0 %330  ;;  %v363_v38 = vpop.permute.xlu1 %362 }
  0x97   : > { %v341_v23 = vsel %vm340_vm3, %v331_v22, %v335_v18 }
  0x98   : > { %v344_v26 = vpack.c.bf16 %v343_v24, %v341_v23 }
  0x9a   : > { %v387_v27 = vand.u32 %v385_v25, %v344_v26 }
  0x9b   : > { %v612_v4 = vpop.permute.xlu1 %611 }
  0x9c   : > { %1168 = vmatprep.subr.bf16.mxu0 %v387_v27 }
  0x9d   : > { %1169 = vmatpush3.bf16.msra.mxu0 %v387_v27 }
  0x9e   : > { %1248 = vmatprep.subr.bf16.mxu0 %v1432_v29 }
  0xa0   : > { %1171 = vmatmul.mubr.msk.bf16.vlgmr.msra.gmra.mrb[0].mxu0 %vm375_vm1, %v1357_v28  ;;  %v632_v10 = vpop.permute.xlu1 %631 }
  0xa1   : > { %1193 = vmatprep.mubr.msk.f32.mxu0 %vm1433_vm6, %v1434_v30 }
  0xa4   : > { %v636_v13 = vpop.permute.xlu1 %635 }
  0xa7   : > { %v358_v35 = vpop.permute.xlu0 %357 }
  0xa9   : > { %v624_v17 = vpop.permute.xlu1 %623 }
  0xac   : > { %v616_v11 = vpop.permute.xlu0 %615 }
  0xae   : > { %v644_v25 = vpop.permute.xlu1 %643 }
  0xb0   : > { %v620_v18 = vpop.permute.xlu0 %619 }
  0xb5   : > { %v640_v26 = vpop.permute.xlu0 %639 }
 0x173   : > { %v1172_v33 = vpop.f32.mrb[0].mxu0 }
 0x174   : > { %v423_v34 = vpop.f32.mrb[1].mxu0  ;;  %v432_v42 = vadd.f32 %v1172_v33, %v358_v35 }
 0x175   : > { %v424_v36 = vadd.f32 %v423_v34, %v348_v31  ;;  %v1173_v37 = vpop.f32.mrb[2].mxu0 }
 0x176   : > { %v426_v39 = vpop.f32.mrb[3].mxu0  ;;  %v435_v40 = vadd.f32 %v1173_v37, %v363_v38  ;;  %v440_v47 = vmax.f32 %v432_v42, 0.0 }
 0x177   : > { %v427_v41 = vadd.f32 %v426_v39, %v353_v32  ;;  %v438_v43 = vmax.f32 %v424_v36, 0.0 }
 0x178   : > { %v441_v45 = vmax.f32 %v435_v40, 0.0 }
 0x179   : > { %v439_v44 = vmax.f32 %v427_v41, 0.0 }
 0x17a   : > { %v1246_v48 = vpack.c.bf16 %v441_v45, %v440_v47 }
 0x17b   : > { %v1243_v46 = vpack.c.bf16 %v439_v44, %v438_v43 }
 0x17d   : > { %1244 = vmatpush3.bf16.msra.mxu1 %v1243_v46  ;;  %v1438_v46 = vmov 3  }
 0x17e   : > { %1245 = vmatprep.subr.bf16.mxu1 %v1432_v29  ;;  %1347 = vset.pattern.permute.xlu1 %v1438_v46 }
 0x17f   : > { %1348 = vset.pattern.permute.xlu0 %v1438_v46 }
 0x181   : > { %1247 = vmatpush3.bf16.msra.mxu1 %v1246_v48 }
 0x184   : > { %1183 = vmatmul.mubr.msk.f32.vlgmr.msra.gmra.mrb[0].mxu1 %vm442_vm7, %v1435_v49 }
 0x257   : > { %v512_v52 = vpop.f32.mrb[0].mxu1 }
 0x258   : > { %v516_v53 = vmul.f32 0.03125, %v512_v52  ;;  %v1184_v54 = vpop.f32.mrb[1].mxu1 }
 0x25a   : > { %v520_v55 = vrot.slane %v516_v53, %v1536_v2 }
 0x25c   : > { %v521_v56 = vsub.f32 %v438_v43, %v520_v55  ;;  %v522_v57 = vsub.f32 %v439_v44, %v520_v55  ;;  %v523_v58 = vsub.f32 %v440_v47, %v520_v55  ;;  %v524_v59 = vsub.f32 %v441_v45, %v520_v55  ;;  %v1358_v45 = vld [vmem:[%s1718_s4] sm:$0xff]  }
 0x25d   : > { %1208 = vmatprep.mubr.msk.bf16.mxu1 %vm706_vm8, %v1358_v45 }
 0x25e   : > { %v525_v60 = vmul.f32 %v521_v56, %v521_v56  ;;  %v526_v61 = vmul.f32 %v522_v57, %v522_v57  ;;  %v527_v63 = vmul.f32 %v523_v58, %v523_v58  ;;  %v528_v0 = vmul.f32 %v524_v59, %v524_v59 }
 0x260   : > { %v1249_v62 = vpack.c.bf16 %v526_v61, %v525_v60  ;;  %v1252_v1 = vpack.c.bf16 %v528_v0, %v527_v63  ;;  %v1359_v0 = vld [vmem:[%s1718_s4 + $0x8] sm:$0xff]  }
 0x262   : > { %1250 = vmatpush3.bf16.msra.mxu0 %v1249_v62 }
 0x263   : > { %1251 = vmatprep.subr.bf16.mxu0 %v1432_v29 }
 0x266   : > { %1253 = vmatpush3.bf16.msra.mxu0 %v1252_v1 }
 0x267   : > { %1254 = vmatprep.subr.bf16.mxu0 %v1432_v29 }
 0x269   : > { %1194 = vmatmul.mubr.msk.f32.vlgmr.msra.gmra.mrb[4].mxu0 %vm442_vm7, %v1435_v49 }
 0x26a   : > { %1220 = vmatprep.mubr.msk.f32.mxu0 %vm1433_vm6, %v1434_v30 }
 0x33c   : > { %v595_v6 = vpop.f32.mrb[4].mxu0 }
 0x33d   : > { %v599_v7 = vmul.f32 0.03125, %v595_v6  ;;  %v1195_v8 = vpop.f32.mrb[5].mxu0 }
 0x33f   : > { %v600_v9 = vadd.f32 1e-05, %v599_v7 }
 0x341   : > { %1360 = vrsqrt.f32 %v600_v9 }
 0x34b   : > { %v1361_v19 = vpop.eup %1360 }
 0x34c   : > { %v605_v20 = vrot.slane %v1361_v19, %v1536_v2 }
 0x34e   : > { %v606_v21 = vmul.f32 %v605_v20, %v521_v56  ;;  %v607_v22 = vmul.f32 %v605_v20, %v522_v57  ;;  %v609_v23 = vmul.f32 %v605_v20, %v524_v59  ;;  %v608_v24 = vmul.f32 %v605_v20, %v523_v58 }
 0x350   : > { %v626_v27 = vmul.f32 %v612_v4, %v606_v21  ;;  %v627_v28 = vmul.f32 %v616_v11, %v607_v22  ;;  %v629_v31 = vmul.f32 %v624_v17, %v609_v23  ;;  %v628_v32 = vmul.f32 %v620_v18, %v608_v24 }
 0x352   : > { %v646_v33 = vadd.f32 %v632_v10, %v626_v27  ;;  %v647_v34 = vadd.f32 %v636_v13, %v627_v28  ;;  %v649_v35 = vadd.f32 %v644_v25, %v629_v31  ;;  %v648_v36 = vadd.f32 %v640_v26, %v628_v32 }
 0x353   : > { %v1439_v26 = vmov 4   ;;  %v1440_v27 = vmov 5  }
 0x354   : > { %v654_v37 = vmul.f32 %v646_v33, %v1548_v5  ;;  %v655_v38 = vmul.f32 %v647_v34, %v1548_v5  ;;  %v657_v39 = vmul.f32 %v649_v35, %v1548_v5  ;;  %v656_v40 = vmul.f32 %v648_v36, %v1548_v5 }
 0x356   : > { %v1332_v41 = vpack.i.bf16 %v657_v39, %v656_v40  ;;  %v1327_v42 = vpack.i.bf16 %v655_v38, %v654_v37  ;;  %v676_v43 = vpack.c.bf16 %v655_v38, %v654_v37  ;;  %v677_v44 = vpack.c.bf16 %v657_v39, %v656_v40 }
 0x358   : > { %1333 = vrot.lane.b32.xlu0 %v1332_v41, %s1430_s17  ;;  %1328 = vrot.lane.b32.xlu1 %v1327_v42, %s1430_s17 }
 0x35c   : > { %1343 = vrot.lane.b32.xlu0 %v1332_v41, %s1428_s9  ;;  %1338 = vrot.lane.b32.xlu1 %v1327_v42, %s1428_s9  ;;  %v1441_v41 = vmov 6   ;;  %s1442_s9 = smov [#allocation2]  }
 0x35d   : > { %s1368_s13 = sshll.u32 %s1442_s9, 4  ;;  %s1369_s13 = int_to_ptr.vmem [resolvable:$false] %s1368_s13 }
 0x35e   : > { %s1370_s14 = scalar_lea.vmem %s1369_s13, 32  ;;  %p1371_p0 = scmp.lt.s32.totalorder %s1674_s21, %s1369_s13 }
 0x35f   : > { %p1372_p1 = scmp.lt.s32.totalorder %s1370_s14, %s1364_s8 }
 0x360   : > { %681 = vperm.xlu1 %1347, %v1561_v12   ;;  %685 = vperm.xlu0 %1348, %v1567_v14  }
 0x361   : > { %p1373_p2 = por %p1372_p1, %p1371_p0 }
 0x363   : > { %p1374_p3 = pnand %p1373_p2, %p1367_p13 }
 0x364   : > { %689 = vperm.xlu1 %1347, %v1573_v15   ;;  %1349 = vset.pattern.permute.xlu0 %v1439_v26 }
 0x365   : > { %931 = vperm.xlu0 %1349, %v1561_v12  }
 0x368   : > { %693 = vperm.xlu1 %1347, %v1579_v16  }
 0x369   : > { %1352 = vset.pattern.permute.xlu0 %v1440_v27 }
 0x36a   : > { %955 = vperm.xlu0 %1352, %v1567_v14  }
 0x36c   : > { %1350 = vset.pattern.permute.xlu1 %v1439_v26 }
 0x36d   : > { %935 = vperm.xlu1 %1350, %v1567_v14  }
 0x36e   : > { %959 = vperm.xlu0 %1352, %v1573_v15  }
 0x371   : > { %1351 = vset.pattern.permute.xlu1 %v1440_v27 }
 0x372   : > { %951 = vperm.xlu1 %1351, %v1561_v12   ;;  %1355 = vset.pattern.permute.xlu0 %v1441_v41 }
 0x376   : > { %1353 = vset.pattern.permute.xlu1 %v1439_v26 }
 0x377   : > { %939 = vperm.xlu1 %1353, %v1573_v15  }
 0x37b   : > { %943 = vperm.xlu1 %1353, %v1579_v16  }
 0x37f   : > { %1354 = vset.pattern.permute.xlu1 %v1440_v27 }
 0x380   : > { %963 = vperm.xlu1 %1354, %v1579_v16   ;;  %v317_v16 = vld [vmem:[%s1720_s6] sm:$0x1] }
 0x381   : > { %979 = vperm.xlu0 %1355, %v317_v16  }
 0x3ca   : > { %v1334_v47 = vpop.permute.xlu0 %1333  ;;  %v1329_v48 = vpop.permute.xlu1 %1328 }
 0x3cb   : > { %v1336_v50 = vunpack.i.h.bf16 %v1334_v47  ;;  %v1335_v51 = vunpack.i.l.bf16 %v1334_v47  ;;  %v1331_v52 = vunpack.i.h.bf16 %v1329_v48  ;;  %v1330_v53 = vunpack.i.l.bf16 %v1329_v48 }
 0x3cd   : > { %v674_v54 = vpack.c.bf16 %v1331_v52, %v1330_v53  ;;  %v675_v55 = vpack.c.bf16 %v1336_v50, %v1335_v51 }
 0x3ce   : > { %v1339_v56 = vpop.permute.xlu1 %1338  ;;  %v1344_v59 = vpop.permute.xlu0 %1343 }
 0x3cf   : > { %1196 = vmatprep.subr.bf16.mxu1 %v674_v54  ;;  %v1341_v57 = vunpack.i.h.bf16 %v1339_v56  ;;  %v1340_v58 = vunpack.i.l.bf16 %v1339_v56  ;;  %v1346_v60 = vunpack.i.h.bf16 %v1344_v59  ;;  %v1345_v61 = vunpack.i.l.bf16 %v1344_v59 }
 0x3d0   : > { %1197 = vmatpush3.bf16.msra.mxu1 %v674_v54 }
 0x3d1   : > { %1198 = vmatprep.subr.bf16.mxu1 %v675_v55  ;;  %v678_v62 = vpack.c.bf16 %v1341_v57, %v1340_v58  ;;  %v679_v63 = vpack.c.bf16 %v1346_v60, %v1345_v61 }
 0x3d4   : > { %1199 = vmatpush3.bf16.msra.mxu1 %v675_v55 }
 0x3d5   : > { %1200 = vmatprep.subr.bf16.mxu1 %v676_v43 }
 0x3d8   : > { %1201 = vmatpush3.bf16.msra.mxu1 %v676_v43 }
 0x3d9   : > { %1202 = vmatprep.subr.bf16.mxu1 %v677_v44 }
 0x3dc   : > { %1203 = vmatpush3.bf16.msra.mxu1 %v677_v44 }
 0x3dd   : > { %1204 = vmatprep.subr.bf16.mxu1 %v678_v62 }
 0x3df   : > { %v682_v1 = vpop.permute.xlu1 %681  ;;  %v686_v8 = vpop.permute.xlu0 %685 }
 0x3e0   : > { %1205 = vmatpush3.bf16.msra.mxu1 %v678_v62 }
 0x3e1   : > { %1206 = vmatprep.subr.bf16.mxu1 %v679_v63 }
 0x3e3   : > { %v690_v4 = vpop.permute.xlu1 %689 }
 0x3e4   : > { %1207 = vmatpush3.bf16.msra.mxu1 %v679_v63  ;;  %v932_v47 = vpop.permute.xlu0 %931 }
 0x3e7   : > { %1209 = vmatmul.mubr.msk.bf16.vlgmr.msra.gmra.mrb[4].mxu1 %vm706_vm8, %v1359_v0  ;;  %v694_v11 = vpop.permute.xlu1 %693 }
 0x3ec   : > { %v936_v42 = vpop.permute.xlu1 %935 }
 0x3f1   : > { %v952_v45 = vpop.permute.xlu1 %951 }
 0x3f6   : > { %v940_v48 = vpop.permute.xlu1 %939 }
 0x3fa   : > { %v944_v50 = vpop.permute.xlu1 %943 }
 0x3ff   : > { %v964_v58 = vpop.permute.xlu1 %963 }
 0x4ba   : > { %v1210_v6 = vpop.f32.mrb[4].mxu1 }
 0x4bb   : > { %v747_v7 = vpop.f32.mrb[5].mxu1  ;;  %v756_v19 = vadd.f32 %v1210_v6, %v690_v4 }
 0x4bc   : > { %v748_v9 = vadd.f32 %v747_v7, %v682_v1  ;;  %v1211_v10 = vpop.f32.mrb[6].mxu1 }
 0x4bd   : > { %v750_v13 = vpop.f32.mrb[7].mxu1  ;;  %v759_v17 = vadd.f32 %v1211_v10, %v694_v11  ;;  %v764_v24 = vmax.f32 %v756_v19, 0.0  ;;  %v976_v11 = vld [vmem:[%s1719_s5] sm:$0x1] }
 0x4be   : > { %v751_v18 = vadd.f32 %v750_v13, %v686_v8  ;;  %v762_v20 = vmax.f32 %v748_v9, 0.0 }
 0x4bf   : > { %v765_v22 = vmax.f32 %v759_v17, 0.0 }
 0x4c0   : > { %v763_v21 = vmax.f32 %v751_v18, 0.0 }
 0x4c1   : > { %v1258_v25 = vpack.c.bf16 %v765_v22, %v764_v24 }
 0x4c2   : > { %v1255_v23 = vpack.c.bf16 %v763_v21, %v762_v20 }
 0x4c4   : > { %1256 = vmatpush3.bf16.msra.mxu0 %v1255_v23 }
 0x4c5   : > { %1257 = vmatprep.subr.bf16.mxu0 %v1432_v29 }
 0x4c8   : > { %1259 = vmatpush3.bf16.msra.mxu0 %v1258_v25 }
 0x4c9   : > { %1260 = vmatprep.subr.bf16.mxu0 %v1432_v29 }
 0x4cb   : > { %1221 = vmatmul.mubr.msk.f32.vlgmr.msra.gmra.mrb[6].mxu0 %vm442_vm7, %v1435_v49 }
 0x4cc   : > { %1231 = vmatprep.mubr.msk.f32.mxu0 %vm1433_vm6, %v1434_v30 }
 0x59e   : > { %v832_v28 = vpop.f32.mrb[6].mxu0 }
 0x59f   : > { %v836_v31 = vmul.f32 0.03125, %v832_v28  ;;  %v1222_v32 = vpop.f32.mrb[7].mxu0 }
 0x5a1   : > { %v840_v33 = vrot.slane %v836_v31, %v1536_v2 }
 0x5a3   : > { %v841_v34 = vsub.f32 %v762_v20, %v840_v33  ;;  %v842_v35 = vsub.f32 %v763_v21, %v840_v33  ;;  %v843_v12 = vsub.f32 %v764_v24, %v840_v33  ;;  %v844_v36 = vsub.f32 %v765_v22, %v840_v33 }
 0x5a5   : > { %v845_v14 = vmul.f32 %v841_v34, %v841_v34  ;;  %v846_v37 = vmul.f32 %v842_v35, %v842_v35  ;;  %v847_v39 = vmul.f32 %v843_v12, %v843_v12  ;;  %v848_v40 = vmul.f32 %v844_v36, %v844_v36 }
 0x5a7   : > { %v1261_v38 = vpack.c.bf16 %v846_v37, %v845_v14  ;;  %v1264_v15 = vpack.c.bf16 %v848_v40, %v847_v39 }
 0x5a9   : > { %1262 = vmatpush3.bf16.msra.mxu0 %v1261_v38 }
 0x5aa   : > { %1263 = vmatprep.subr.bf16.mxu0 %v1432_v29 }
 0x5ad   : > { %1265 = vmatpush3.bf16.msra.mxu0 %v1264_v15 }
 0x5ae   : > { %1234 = vmatprep.subr.bf16.mxu0 %v1434_v30 }
 0x5b0   : > { %1232 = vmatmul.mubr.msk.f32.vlgmr.msra.gmra.mrb[8].mxu0 %vm442_vm7, %v1435_v49  ;;  %v956_v49 = vpop.permute.xlu0 %955 }
 0x5b1   : > { %1238 = vmatprep.mubr.msk.bf16.mxu0 %vm1433_vm6, %v1434_v30 }
 0x5b4   : > { %v960_v57 = vpop.permute.xlu0 %959 }
 0x5b8   : > { %v980_v13 = vpop.permute.xlu0 %979 }
 0x683   : > { %v915_v43 = vpop.f32.mrb[8].mxu0 }
 0x684   : > { %v919_v29 = vmul.f32 0.03125, %v915_v43  ;;  %v1233_v44 = vpop.f32.mrb[9].mxu0 }
 0x686   : > { %v920_v46 = vadd.f32 1e-05, %v919_v29 }
 0x688   : > { %1362 = vrsqrt.f32 %v920_v46 }
 0x692   : > { %v1363_v51 = vpop.eup %1362 }
 0x693   : > { %v925_v52 = vrot.slane %v1363_v51, %v1536_v2 }
 0x695   : > { %v927_v53 = vmul.f32 %v925_v52, %v842_v35  ;;  %v926_v54 = vmul.f32 %v925_v52, %v841_v34  ;;  %v928_v55 = vmul.f32 %v925_v52, %v843_v12  ;;  %v929_v56 = vmul.f32 %v925_v52, %v844_v36 }
 0x697   : > { %v947_v59 = vmul.f32 %v936_v42, %v927_v53  ;;  %v946_v60 = vmul.f32 %v932_v47, %v926_v54  ;;  %v948_v61 = vmul.f32 %v940_v48, %v928_v55  ;;  %v949_v62 = vmul.f32 %v944_v50, %v929_v56 }
 0x699   : > { %v966_v63 = vadd.f32 %v952_v45, %v946_v60  ;;  %v967_v0 = vadd.f32 %v956_v49, %v947_v59  ;;  %v968_v1 = vadd.f32 %v960_v57, %v948_v61  ;;  %v969_v4 = vadd.f32 %v964_v58, %v949_v62 }
 0x69b   : > { %v970_v6 = vmul.f32 %v966_v63, %v1548_v5  ;;  %v971_v2 = vmul.f32 %v967_v0, %v1548_v5  ;;  %v972_v8 = vmul.f32 %v968_v1, %v1548_v5  ;;  %v973_v9 = vmul.f32 %v969_v4, %v1548_v5 }
 0x69d   : > { %v974_v7 = vpack.c.bf16 %v971_v2, %v970_v6  ;;  %v975_v10 = vpack.c.bf16 %v973_v9, %v972_v8 }
 0x69f   : > { %1235 = vmatpush3.bf16.msra.mxu0 %v974_v7 }
 0x6a0   : > { %1236 = vmatprep.subr.bf16.mxu0 %v1434_v30 }
 0x6a3   : > { %1237 = vmatpush3.bf16.msra.mxu0 %v975_v10 }
 0x6a6   : > { %1239 = vmatmul.mubr.msk.bf16.vlgmr.msra.gmra.mrb[12].mxu0 %vm442_vm7, %v976_v11 }
 0x779   : > { %v1019_v17 = vpop.f32.mrb[12].mxu0 }
 0x77a   : > { %v1020_v18 = vadd.f32 %v1019_v17, %v980_v13  ;;  %v1240_v5 = vpop.f32.mrb[13].mxu0 }
 0x77b   : > { %v1022_v19 = vpop.f32.mrb[14].mxu0 }
 0x77c   : > { %v1025_v30 = vmul.f32 %v1020_v18, %v1544_v3  ;;  %v1241_v20 = vpop.f32.mrb[15].mxu0 }
 0x77e   : > { %1026 = vst [vmem:[%s290_s20] sm:$0x1] %v1025_v30 }
 0x77f   : > { %1377 = shalt.err (!%p1374_p3)
}
 0x780   : > { %s1378_s15 = scalar_lea.hbm %s1672_s29, 16  ;;  %s1382_s18 = scalar_lea.hbm %s1721_s7, 32 }
 0x781   : > { %p1379_p4 = scmp.ne.s32.totalorder %s1672_s29, %s1378_s15  ;;  %p1383_p9 = scmp.lt.u32.totalorder %s1672_s29, %s1721_s7 }
 0x782   : > { %p1384_p10 = scmp.lt.u32.totalorder %s1382_s18, %s1378_s15  ;;  %p1386_p12 = scmp.lt.u32.totalorder %s1378_s15, %s1672_s29 }
 0x783   : > { %p1380_p7 = pnand %p1379_p4, %p1521_p5 }
 0x784   : > { %p1385_p11 = por %p1384_p10, %p1383_p9 }
 0x785   : > { %p1381_p8 = pneg %p1380_p7 }
 0x786   : > { %p1387_p13 = por %p1386_p12, %p1385_p11 }
 0x788   : > { %p1388_p0 = pnand %p1387_p13, %p1381_p8 }
 0x78a   : > { %1391 = shalt.err (!%p1388_p0)
}
 0x78b   : > { %1266 = dma.vmem_to_hbm [thread:$0]  (%p1521_p5), %s1674_s21, 16, %s1672_s29, %s1028_s28  }
 0x78c PF: > { %p1272_p1 = scmp.ge.s32.totalorder %s1426_s27, 2  ;;  %s1052_s22 = sand.u32 1, %s1414_s24  }
 0x78d   : > { %s1053_s23 = scalar_lea.sflag [#allocation3], %s1052_s22 }
 0x78e   : > { %p1269_p2 = pnand %p1272_p1, %p1525_p6 }
 0x790   : > { %1409 = dma.done.wait (!%p1269_p2), %s1053_s23, 16  }
 0x791   : > { %1411 = vsyncadd (!%p1269_p2), %s1053_s23, 4294967280  ;;  %p17_p3 = scmp.ge.s32.totalorder %s1508_s30, 4   ;;  %s1724_s24 = smov %s1418_s25 }
 0x792   : > { %s1725_s25 = smov %s1422_s26  ;;  %s1726_s26 = smov %s1519_s10 }
 0x793   : > { %s1727_s27 = smov %s1508_s30  ;;  %19 = sbr.rel (!%p17_p3) target bundleno = 3 (0x3), region = 89 }
 0x79a   :  { %1057 = vsyncpa [#allocation3], 1 }
 0x79b   :  { %1059 = vsyncpa [#allocation3 + $0x1], 1 }

</bundles_post_ra>
